<compile_context>
chip_gen: v5e
topology: v5e:2x2
jax: 0.10.0
libtpu: 0.0.40
codegen_flags: <defaults>
</compile_context>

<pallas_src>
import functools

import jax
import jax.numpy as jnp
from jax import lax
from jax.experimental import pallas as pl
from jax.experimental.pallas import tpu as pltpu

GLOBAL_REVIEW_SIZE = 64  # global_review_size in the PyTorch module


def _round_up(x, m):
    return (x + m - 1) // m * m


def _gcn_kernel(dst_ref, ef_ref, wbig_ref, out_ref, acc_ref, *, mm_precision):
    """One (N_dst-tile i, E-tile k) grid step.

    dst_ref  : [1, TE]   int32    dst node id of each edge in this E tile (-1 = pad)
    ef_ref   : [TE, C]   f32/bf16 concat([feature[src[e]], review_feat[e]]) * ci_src[src[e]]
    wbig_ref : [C, C]    f32      block-diag [[I_DH, 0], [0, W.T]] (zero padded)
    out_ref  : [TN, C]   f32      output tile (written once, at the last E step)
    acc_ref  : [TN, C]   f32      VMEM accumulator scratch
    """
    i = pl.program_id(0)
    k = pl.program_id(1)

    @pl.when(k == 0)
    def _():
        acc_ref[...] = jnp.zeros_like(acc_ref)

    tn = acc_ref.shape[0]

    # 0/1 scatter indicator built in the compute dtype from a (TN, 1) iota
    # broadcast against the lane-dense [1, TE] dst-id row.  The dst pad value
    # (-1) never matches a non-negative row id, and padded ef rows are zero.
    ef = ef_ref[...]
    row_ids = i * tn + lax.broadcasted_iota(jnp.int32, (tn, 1), 0)
    adj = (row_ids == dst_ref[...]).astype(ef.dtype)

    # Scatter-sum as one [TN, TE] x [TE, C] MXU matmul, accumulated in f32.
    acc_ref[...] += jnp.dot(adj, ef,
                            preferred_element_type=jnp.float32,
                            precision=mm_precision)

    @pl.when(k == pl.num_programs(1) - 1)
    def _():
        # Epilogue: apply the Linear to the *aggregated* rows via one
        # block-diagonal matmul and emit a single 128-lane-wide store.
        # (wbig is a constant 64 KiB block; its double-buffer is negligible.)
        res = jnp.dot(acc_ref[...], wbig_ref[...],
                      preferred_element_type=jnp.float32,
                      precision=lax.Precision.HIGHEST)
        out_ref[...] = res.astype(out_ref.dtype)


def gcn_interaction(feature, review_feat, ci_src, ci_dst, src_idx, dst_idx, w,
                    *, compute_dtype=jnp.bfloat16, tn_target=2048,
                    te_target=1024):
    """Forward of GCN_interaction. `w` is the nn.Linear weight, shape [out=64, in=64].

    compute_dtype:
      bfloat16 (default) -> single-pass MXU matmuls + half the ef DMA bytes;
                            accumulation stays f32 (error ~bf16 operand rounding).
      float32            -> Precision.HIGH matmuls; since adj is exactly 0/1 this
                            reproduces the f32 reference to ~1e-5 (MXU is bf16-
                            decomposition based, not true fp32 multiply).

    tn_target: pick large enough that n_pad//tn == 1 on v5e/v6e (ef streamed from
      HBM once); on v7x prefer n_pad//tn even and >= 2 so the "parallel" grid
      axis shards across both TensorCores.
    """
    e = int(review_feat.shape[0])
    dh = int(feature.shape[1])
    n_dst = int(ci_dst.shape[0])
    c = dh + GLOBAL_REVIEW_SIZE

    # --- tile sizes ---
    tn = min(tn_target, _round_up(n_dst, 8))
    te = min(te_target, _round_up(e, 128))
    n_pad = _round_up(n_dst, tn)
    e_pad = _round_up(e, te)
    c_pad = _round_up(c, 128)

    # --- glue: gathers, ci_src fold-in, padding, block-diag weight (plain JAX) ---
    src_idx = jnp.asarray(src_idx, jnp.int32)
    dst_idx = jnp.asarray(dst_idx, jnp.int32)

    ci_e = jnp.take(jnp.asarray(ci_src, jnp.float32), src_idx, axis=0)      # [E, 1]
    ef = jnp.concatenate(
        [jnp.take(feature, src_idx, axis=0).astype(jnp.float32),
         jnp.asarray(review_feat, jnp.float32)], axis=1) * ci_e             # [E, C]
    ef = jnp.pad(ef, ((0, e_pad - e), (0, c_pad - c))).astype(compute_dtype)

    dst_row = jnp.pad(dst_idx.reshape(1, e), ((0, 0), (0, e_pad - e)),
                      constant_values=-1)                                   # [1, E_pad]

    wbig = jnp.zeros((c_pad, c_pad), jnp.float32)
    wbig = wbig.at[:dh, :dh].set(jnp.eye(dh, dtype=jnp.float32))
    wbig = wbig.at[dh:c, dh:c].set(jnp.asarray(w, jnp.float32).T)           # [C_pad, C_pad]

    # adj is exactly 0/1, so HIGH (bf16_3x) is lossless for the f32 path and
    # half the MXU passes of HIGHEST; bf16 operands use the single-pass default.
    mm_precision = (lax.Precision.HIGH
                    if jnp.dtype(compute_dtype) == jnp.dtype(jnp.float32)
                    else lax.Precision.DEFAULT)

    grid = (n_pad // tn, e_pad // te)

    out = pl.pallas_call(
        functools.partial(_gcn_kernel, mm_precision=mm_precision),
        out_shape=jax.ShapeDtypeStruct((n_pad, c_pad), jnp.float32),
        grid=grid,
        in_specs=[
            pl.BlockSpec((1, te), lambda i, k: (0, k)),         # dst ids (lane-dense)
            pl.BlockSpec((te, c_pad), lambda i, k: (k, 0)),     # edge features (ci_src folded in)
            pl.BlockSpec((c_pad, c_pad), lambda i, k: (0, 0)),  # block-diag [[I,0],[0,W.T]]
        ],
        out_specs=pl.BlockSpec((tn, c_pad), lambda i, k: (i, 0)),
        scratch_shapes=[pltpu.VMEM((tn, c_pad), jnp.float32)],
        compiler_params=pltpu.CompilerParams(
            dimension_semantics=("parallel", "arbitrary"),
            vmem_limit_bytes=48 * 1024 * 1024),
    )(dst_row, ef, wbig)

    # Tiny XLA epilogue: per-dst ci scale (avoids a lane-padded (TN,1) VMEM
    # operand and its strided DMA inside the kernel).
    return out[:n_dst, :c] * jnp.asarray(ci_dst, jnp.float32)


if __name__ == "__main__":
    key = jax.random.PRNGKey(0)
    N_SRC, N_DST, E, DH = 16, 16, 32, 64

    ks = jax.random.split(key, 7)
    feature = jax.random.normal(ks[0], (N_SRC, DH), jnp.float32)
    review_feat = jax.random.normal(ks[1], (E, 64), jnp.float32)
    ci_src = jax.random.uniform(ks[2], (N_SRC, 1), jnp.float32, 0.1, 1.0)
    ci_dst = jax.random.uniform(ks[3], (N_DST, 1), jnp.float32, 0.1, 1.0)
    src_idx = jax.random.randint(ks[4], (E,), 0, N_SRC, dtype=jnp.int32)
    dst_idx = jax.random.randint(ks[5], (E,), 0, N_DST, dtype=jnp.int32)
    # Deterministic stand-in for nn.Linear(64, 64, bias=False).weight -> [out, in]
    w = jax.random.uniform(ks[6], (64, 64), jnp.float32, -0.125, 0.125)

    out_bf16 = gcn_interaction(feature, review_feat, ci_src, ci_dst,
                               src_idx, dst_idx, w)               # bf16 default
    out_f32 = gcn_interaction(feature, review_feat, ci_src, ci_dst,
                              src_idx, dst_idx, w, compute_dtype=jnp.float32)
    out_bf16, out_f32 = jax.block_until_ready((out_bf16, out_f32))

    # Pure-JAX reference (same eval-mode semantics as the PyTorch module).
    r_ref = review_feat @ w.T
    m_ref = jnp.concatenate([feature[src_idx], r_ref], axis=1) * ci_src[src_idx]
    h_ref = jnp.zeros((N_DST, DH + GLOBAL_REVIEW_SIZE),
                      jnp.float32).at[dst_idx].add(m_ref)
    rst_ref = h_ref * ci_dst

    assert out_f32.shape == (N_DST, DH + GLOBAL_REVIEW_SIZE)
    assert out_bf16.shape == (N_DST, DH + GLOBAL_REVIEW_SIZE)
    assert jnp.allclose(out_f32, rst_ref, atol=1e-4, rtol=1e-4), "f32 path mismatch"
    assert jnp.allclose(out_bf16, rst_ref, atol=5e-2, rtol=5e-2), "bf16 path mismatch"
    print("KERNEL_OK")
</pallas_src>

<mosaic_0001>
module attributes {stable_mosaic.version = 11 : i64} {
  func.func @_gcn_kernel(%arg0: i32, %arg1: i32, %arg2: memref<1x128xi32, #tpu.memory_space<vmem>>, %arg3: memref<128x128xbf16, #tpu.memory_space<vmem>>, %arg4: memref<128x128xf32, #tpu.memory_space<vmem>>, %arg5: memref<16x128xf32, #tpu.memory_space<vmem>>, %arg6: memref<16x128xf32, #tpu.memory_space<vmem>>) attributes {dimension_semantics = [#tpu.dimension_semantics<parallel>, #tpu.dimension_semantics<arbitrary>], iteration_bounds = array<i64: 1, 1>, scalar_prefetch = 0 : i64, scratch_operands = 1 : i64, tpu.core_type = #tpu.core_type<tc>, window_params = [{transform_indices = @transform_0, window_bounds = array<i64: 1, 128>}, {transform_indices = @transform_1, window_bounds = array<i64: 128, 128>}, {pipeline_mode = #tpu.pipeline_mode<synchronous>, transform_indices = @transform_2, window_bounds = array<i64: 128, 128>}, {transform_indices = @transform_3, window_bounds = array<i64: 16, 128>}]} {
    %c0_i32 = arith.constant 0 : i32
    %0 = arith.cmpi eq, %arg1, %c0_i32 : i32
    %1 = arith.extui %0 : i1 to i32
    %c0_i32_0 = arith.constant 0 : i32
    %2 = arith.cmpi ne, %1, %c0_i32_0 : i32
    scf.if %2 {
      %cst_10 = arith.constant 0.000000e+00 : f32
      %22 = vector.broadcast %cst_10 : f32 to vector<16x128xf32>
      %c0_11 = arith.constant 0 : index
      %c0_12 = arith.constant 0 : index
      %23 = vector.load %arg6[%c0_11, %c0_12] : memref<16x128xf32, #tpu.memory_space<vmem>>, vector<16x128xf32>
      tpu.vector_store %arg6[%c0_11, %c0_12], %22 {strides = array<i32>} : memref<16x128xf32, #tpu.memory_space<vmem>>, vector<16x128xf32>,
    } else {
    }
    %c0 = arith.constant 0 : index
    %c0_1 = arith.constant 0 : index
    %3 = vector.load %arg3[%c0, %c0_1] : memref<128x128xbf16, #tpu.memory_space<vmem>>, vector<128x128xbf16>
    %c16_i32 = arith.constant 16 : i32
    %4 = arith.muli %arg0, %c16_i32 : i32
    %5 = tpu.iota {dimensions = array<i32: 0>} : vector<16x1xi32>
    %6 = vector.broadcast %4 : i32 to vector<16x1xi32>
    %7 = arith.addi %6, %5 : vector<16x1xi32>
    %c0_2 = arith.constant 0 : index
    %c0_3 = arith.constant 0 : index
    %8 = vector.load %arg2[%c0_2, %c0_3] : memref<1x128xi32, #tpu.memory_space<vmem>>, vector<1x128xi32>
    %9 = vector.broadcast %7 : vector<16x1xi32> to vector<16x128xi32>
    %10 = vector.broadcast %8 : vector<1x128xi32> to vector<16x128xi32>
    %11 = arith.cmpi eq, %9, %10 : vector<16x128xi32>
    %12 = arith.extui %11 : vector<16x128xi1> to vector<16x128xi32>
    %13 = arith.sitofp %12 : vector<16x128xi32> to vector<16x128xf32>
    %14 = arith.truncf %13 : vector<16x128xf32> to vector<16x128xbf16>
    %c0_4 = arith.constant 0 : index
    %c0_5 = arith.constant 0 : index
    %15 = vector.load %arg6[%c0_4, %c0_5] : memref<16x128xf32, #tpu.memory_space<vmem>>, vector<16x128xf32>
    %cst = arith.constant dense<0.000000e+00> : vector<16x128xf32>
    %16 = tpu.matmul %14, %3, %cst {dimension_numbers = #tpu.dot_dimension_numbers<[1], [0], [0], [1], [0, 0, 1, 1], [], []>} : vector<16x128xbf16>, vector<128x128xbf16>, vector<16x128xf32> -> vector<16x128xf32>
    %17 = arith.addf %15, %16 : vector<16x128xf32>
    %c0_6 = arith.constant 0 : index
    %c0_7 = arith.constant 0 : index
    %18 = vector.load %arg6[%c0_6, %c0_7] : memref<16x128xf32, #tpu.memory_space<vmem>>, vector<16x128xf32>
    tpu.vector_store %arg6[%c0_6, %c0_7], %17 {strides = array<i32>} : memref<16x128xf32, #tpu.memory_space<vmem>>, vector<16x128xf32>,
    %c0_i32_8 = arith.constant 0 : i32
    %19 = arith.cmpi eq, %arg1, %c0_i32_8 : i32
    %20 = arith.extui %19 : i1 to i32
    %c0_i32_9 = arith.constant 0 : i32
    %21 = arith.cmpi ne, %20, %c0_i32_9 : i32
    scf.if %21 {
      %c0_10 = arith.constant 0 : index
      %c0_11 = arith.constant 0 : index
      %22 = vector.load %arg6[%c0_10, %c0_11] : memref<16x128xf32, #tpu.memory_space<vmem>>, vector<16x128xf32>
      %c0_12 = arith.constant 0 : index
      %c0_13 = arith.constant 0 : index
      %23 = vector.load %arg4[%c0_12, %c0_13] : memref<128x128xf32, #tpu.memory_space<vmem>>, vector<128x128xf32>
      %cst_14 = arith.constant dense<0.000000e+00> : vector<16x128xf32>
      %24 = tpu.matmul %22, %23, %cst_14 {dimension_numbers = #tpu.dot_dimension_numbers<[1], [0], [0], [1], [0, 0, 1, 1], [], []>, precision = #tpu.contract_precision<fp32>} : vector<16x128xf32>, vector<128x128xf32>, vector<16x128xf32> -> vector<16x128xf32>
      %c0_15 = arith.constant 0 : index
      %c0_16 = arith.constant 0 : index
      %25 = vector.load %arg5[%c0_15, %c0_16] : memref<16x128xf32, #tpu.memory_space<vmem>>, vector<16x128xf32>
      tpu.vector_store %arg5[%c0_15, %c0_16], %24 {strides = array<i32>} : memref<16x128xf32, #tpu.memory_space<vmem>>, vector<16x128xf32>,
    } else {
    }
    return
  }
  func.func @transform_0(%arg0: i32, %arg1: i32) -> (i32, i32) {
    %c0_i32 = arith.constant 0 : i32
    %c0_i32_0 = arith.constant 0 : i32
    return %c0_i32, %arg1 : i32, i32
  }
  func.func @transform_1(%arg0: i32, %arg1: i32) -> (i32, i32) {
    %c0_i32 = arith.constant 0 : i32
    %c0_i32_0 = arith.constant 0 : i32
    return %arg1, %c0_i32 : i32, i32
  }
  func.func @transform_2(%arg0: i32, %arg1: i32) -> (i32, i32) {
    %c0_i32 = arith.constant 0 : i32
    %c0_i32_0 = arith.constant 0 : i32
    %c0_i32_1 = arith.constant 0 : i32
    return %c0_i32, %c0_i32_0 : i32, i32
  }
  func.func @transform_3(%arg0: i32, %arg1: i32) -> (i32, i32) {
    %c0_i32 = arith.constant 0 : i32
    %c0_i32_0 = arith.constant 0 : i32
    return %arg0, %c0_i32 : i32, i32
  }
}

</mosaic_0001>

<bundles_post_ra>
// kernel: tpu_custom_call.1
= control target key start
LH: loop header
LB: loop body
LE: loop exit
PB: predicated region body
PF: predicated region fallthrough
CT: control target
= control target key end

     0   :  { %8 = vsyncpa [#allocation4], 0  ;;  %s1056_s0 = inlined_call_operand.hbm [shape: s32[1,128], index: 0, kind: input, shape index: {}]   ;;  %s1057_s1 = inlined_call_operand.hbm [shape: bf16[128,128], index: 1, kind: input, shape index: {}]   ;;  %s1058_s2 = inlined_call_operand.hbm [shape: f32[128,128], index: 2, kind: input, shape index: {}]   ;;  %s1059_s3 = inlined_call_operand.hbm [shape: f32[16,128], index: 3, kind: output, shape index: {}]  }
   0x1   :  { %9 = vsyncpa [#allocation7], 0  ;;  %s26_s14 = sshll.u32 %s1057_s1, 4  ;;  %s27_s14 = int_to_ptr.hbm [resolvable:$true] %s26_s14 }
   0x2   :  { %10 = vsyncpa [#allocation5], 0  ;;  %s753_s15 = smov [#allocation6]   ;;  %s16_s19 = sshll.u32 %s1056_s0, 4  ;;  %s17_s19 = int_to_ptr.hbm [resolvable:$true] %s16_s19 }
   0x3   :  { %s28_s16 = sshll.u32 %s753_s15, 4  ;;  %s754_s20 = smov 64   ;;  %s29_s16 = int_to_ptr.vmem [resolvable:$true] %s28_s16 }
   0x4   :  { %s755_s21 = smov 4   ;;  %s756_s22 = smov [#allocation3]  }
   0x5   :  { %34 = dma.hbm_to_vmem [thread:$0]  %s27_s14, 1024, %s29_s16, [#allocation7], %s754_s20, %s754_s20, %s755_s21  }
   0x6   :  { %s18_s23 = sshll.u32 %s756_s22, 4  ;;  %s39_s26 = sshll.u32 %s1058_s2, 4  ;;  %s19_s23 = int_to_ptr.vmem [resolvable:$true] %s18_s23  ;;  %s40_s26 = int_to_ptr.hbm [resolvable:$true] %s39_s26 }
   0x7   :  { %21 = dma.hbm_to_vmem [thread:$0]  %s17_s19, 16, %s19_s23, [#allocation4]  }
   0x8   :  { %s757_s1 = smov [#allocation8]   ;;  %s758_s28 = smov 128  }
   0x9   :  { %s41_s27 = sshll.u32 %s757_s1, 4  ;;  %s759_s29 = smov 8   ;;  %s42_s27 = int_to_ptr.vmem [resolvable:$true] %s41_s27 }
   0xa   :  { %47 = dma.hbm_to_vmem [thread:$0]  %s40_s26, 2048, %s42_s27, [#allocation7], %s758_s28, %s758_s28, %s759_s29  }
   0xb   :  { %747 = dma.done.wait [#allocation4], 16  }
   0xc   :  { %748 = vsyncadd [#allocation4], 4294967280 }
   0xd   :  { %749 = dma.done.wait [#allocation7], 3072  }
   0xe   :  { %750 = vsyncadd [#allocation7], 4294964224  ;;  %v624_v0 = vld [vmem:[#allocation6 + $0x38] sm:$0xff]  ;;  %v623_v1 = vld [vmem:[#allocation6 + $0x30] sm:$0xff]  ;;  %v83_v50 = vlaneseq  ;;  %s761_s0 = smov [#allocation9]   ;;  %s567_s5 = sshll.u32 %s1059_s3, 4  ;;  %s568_s5 = int_to_ptr.hbm [resolvable:$true] %s567_s5 }
   0xf   :  { %148 = vmatpush.bf16.msra.mxu0 %v624_v0  ;;  %v186_v2 = vld [vmem:[#allocation8 + $0x78] sm:$0xff]  ;;  %v185_v3 = vld [vmem:[#allocation8 + $0x70] sm:$0xff]  ;;  %v184_v6 = vld [vmem:[#allocation8 + $0x68] sm:$0xff]  ;;  %s565_s2 = sshll.u32 %s761_s0, 4  ;;  %s566_s2 = int_to_ptr.vmem [resolvable:$true] %s565_s2 }
  0x10   :  { %v794_v4 = vand.u32 4294901760, %v186_v2  ;;  %v796_v5 = vand.u32 4294901760, %v185_v3  ;;  %v183_v7 = vld [vmem:[#allocation8 + $0x60] sm:$0xff]  ;;  %v182_v8 = vld [vmem:[#allocation8 + $0x58] sm:$0xff]  ;;  %v798_v9 = vand.u32 4294901760, %v184_v6  ;;  %v181_v11 = vld [vmem:[#allocation8 + $0x50] sm:$0xff] }
  0x11   :  { %v800_v10 = vand.u32 4294901760, %v183_v7  ;;  %v180_v12 = vld [vmem:[#allocation8 + $0x48] sm:$0xff]  ;;  %v179_v13 = vld [vmem:[#allocation8 + $0x40] sm:$0xff]  ;;  %v809_v17 = vand.u32 4294901760, %v182_v8  ;;  %v811_v18 = vand.u32 4294901760, %v181_v11  ;;  %v178_v37 = vld [vmem:[#allocation8 + $0x38] sm:$0xff] }
  0x12   :  { %v622_v14 = vld [vmem:[#allocation6 + $0x28] sm:$0xff]  ;;  %v803_v15 = vsub.f32 %v186_v2, %v794_v4  ;;  %v806_v16 = vsub.f32 %v185_v3, %v796_v5  ;;  %188 = vmatpush.msra.mxu1 %v794_v4  ;;  %v814_v19 = vsub.f32 %v184_v6, %v798_v9  ;;  %v819_v21 = vand.u32 4294901760, %v180_v12  ;;  %v621_v30 = vld [vmem:[#allocation6 + $0x20] sm:$0xff]  ;;  %v177_v38 = vld [vmem:[#allocation8 + $0x30] sm:$0xff] }
  0x13   :  { %149 = vmatpush.bf16.msra.mxu0 %v623_v1  ;;  %v817_v20 = vsub.f32 %v183_v7, %v800_v10  ;;  %v821_v22 = vand.u32 4294901760, %v179_v13  ;;  %v827_v25 = vsub.f32 %v182_v8, %v809_v17  ;;  %v831_v26 = vsub.f32 %v181_v11, %v811_v18  ;;  %v176_v42 = vld [vmem:[#allocation8 + $0x28] sm:$0xff]  ;;  %v175_v44 = vld [vmem:[#allocation8 + $0x20] sm:$0xff]  ;;  %v620_v45 = vld [vmem:[#allocation6 + $0x18] sm:$0xff] }
  0x14   :  { %v238_v23 = vand.u32 4294901760, %v803_v15  ;;  %v244_v24 = vand.u32 4294901760, %v806_v16  ;;  %343 = vmatpush.msra.mxu3 %v803_v15  ;;  %190 = vmatpush.msra.mxu1 %v796_v5  ;;  %v250_v27 = vand.u32 4294901760, %v814_v19  ;;  %v836_v29 = vsub.f32 %v180_v12, %v819_v21  ;;  %v174_v54 = vld [vmem:[#allocation8 + $0x18] sm:$0xff]  ;;  %v173_v60 = vld [vmem:[#allocation8 + $0x10] sm:$0xff]  ;;  %v172_v6 = vld [vmem:[#allocation8 + $0x8] sm:$0xff] }
  0x15   :  { %v256_v28 = vand.u32 4294901760, %v817_v20  ;;  %v262_v33 = vand.u32 4294901760, %v827_v25  ;;  %v268_v35 = vand.u32 4294901760, %v831_v26  ;;  %v852_v36 = vsub.f32 %v179_v13, %v821_v22  ;;  %v619_v61 = vld [vmem:[#allocation6 + $0x10] sm:$0xff] }
  0x16   :  { %v239_v31 = vsub.f32 %v803_v15, %v238_v23  ;;  %v245_v32 = vsub.f32 %v806_v16, %v244_v24  ;;  %346 = vmatpush.msra.mxu3 %v806_v16  ;;  %v251_v34 = vsub.f32 %v814_v19, %v250_v27  ;;  %192 = vmatpush.msra.mxu1 %v798_v9  ;;  %v274_v43 = vand.u32 4294901760, %v836_v29 }
  0x17   :  { %150 = vmatpush.bf16.msra.mxu0 %v622_v14  ;;  %v257_v41 = vsub.f32 %v817_v20, %v256_v28  ;;  %v263_v47 = vsub.f32 %v827_v25, %v262_v33  ;;  %v863_v48 = vand.u32 4294901760, %v178_v37  ;;  %v865_v49 = vand.u32 4294901760, %v177_v38  ;;  %v171_v14 = vld [vmem:[#allocation8] sm:$0xff] }
  0x18   :  { %v240_v39 = vand.u32 4294901760, %v239_v31  ;;  %v246_v40 = vand.u32 4294901760, %v245_v32  ;;  %349 = vmatpush.msra.mxu3 %v814_v19  ;;  %194 = vmatpush.msra.mxu1 %v800_v10  ;;  %v252_v46 = vand.u32 4294901760, %v251_v34  ;;  %v269_v51 = vsub.f32 %v831_v26, %v268_v35 }
  0x19   :  { %v280_v52 = vand.u32 4294901760, %v852_v36  ;;  %v873_v53 = vand.u32 4294901760, %v176_v42  ;;  %v258_v55 = vand.u32 4294901760, %v257_v41  ;;  %v876_v56 = vsub.f32 %v178_v37, %v863_v48 }
  0x1a   :  { %241 = vmatpush.msra.mxu2 %v240_v39  ;;  %352 = vmatpush.msra.mxu3 %v817_v20  ;;  %v879_v57 = vsub.f32 %v177_v38, %v865_v49  ;;  %v881_v58 = vand.u32 4294901760, %v175_v44  ;;  %v275_v59 = vsub.f32 %v836_v29, %v274_v43  ;;  %v264_v62 = vand.u32 4294901760, %v263_v47  ;;  %v650_v39 = vld [vmem:[#allocation3] ss:$0 sm:$0xff] }
  0x1b   :  { %151 = vmatpush.bf16.msra.mxu0 %v621_v30  ;;  %196 = vmatpush.msra.mxu1 %v809_v17  ;;  %v286_v63 = vand.u32 4294901760, %v876_v56  ;;  %v890_v0 = vsub.f32 %v176_v42, %v873_v53  ;;  %v892_v1 = vand.u32 4294901760, %v174_v54  ;;  %v84_v2 = vshrl.u32 %v83_v50, 7  ;;  %v618_v30 = vld [vmem:[#allocation6 + $0x8] sm:$0xff] }
  0x1c   :  { %247 = vmatpush.msra.mxu2 %v246_v40  ;;  %355 = vmatpush.msra.mxu3 %v827_v25  ;;  %v281_v3 = vsub.f32 %v852_v36, %v280_v52  ;;  %v270_v7 = vand.u32 4294901760, %v269_v51  ;;  %v292_v8 = vand.u32 4294901760, %v879_v57  ;;  %v901_v11 = vsub.f32 %v175_v44, %v881_v58 }
  0x1d   :  { %198 = vmatpush.msra.mxu1 %v811_v18  ;;  %v903_v12 = vand.u32 4294901760, %v173_v60  ;;  %v276_v13 = vand.u32 4294901760, %v275_v59  ;;  %v287_v31 = vsub.f32 %v876_v56, %v286_v63  ;;  %v298_v32 = vand.u32 4294901760, %v890_v0 }
  0x1e   :  { %253 = vmatpush.msra.mxu2 %v252_v46  ;;  %358 = vmatpush.msra.mxu3 %v831_v26  ;;  %v912_v34 = vsub.f32 %v174_v54, %v892_v1  ;;  %v914_v37 = vand.u32 4294901760, %v172_v6  ;;  %v85_v38 = vadd.s32 8, %v84_v2  ;;  %v282_v40 = vand.u32 4294901760, %v281_v3  ;;  %v617_v46 = vld [vmem:[#allocation6] sm:$0xff] }
  0x1f   :  { %152 = vmatpush.bf16.msra.mxu0 %v620_v45  ;;  %200 = vmatpush.msra.mxu1 %v819_v21  ;;  %v293_v41 = vsub.f32 %v879_v57, %v292_v8  ;;  %v304_v42 = vand.u32 4294901760, %v901_v11  ;;  %v923_v44 = vsub.f32 %v173_v60, %v903_v12  ;;  %v925_v45 = vand.u32 4294901760, %v171_v14 }
  0x20   :  { %259 = vmatpush.msra.mxu2 %v258_v55  ;;  %361 = vmatpush.msra.mxu3 %v836_v29  ;;  %v288_v47 = vand.u32 4294901760, %v287_v31  ;;  %v299_v50 = vsub.f32 %v890_v0, %v298_v32  ;;  %v310_v51 = vand.u32 4294901760, %v912_v34  ;;  %v934_v54 = vsub.f32 %v172_v6, %v914_v37 }
  0x21   :  { %202 = vmatpush.msra.mxu1 %v821_v22  ;;  %vm91_vm0 = vcmp.eq.s32.totalorder %v84_v2, %v650_v39  ;;  %vm92_vm1 = vcmp.eq.s32.totalorder %v85_v38, %v650_v39  ;;  %v294_v55 = vand.u32 4294901760, %v293_v41  ;;  %v305_v59 = vsub.f32 %v901_v11, %v304_v42 }
  0x22   :  { %265 = vmatpush.msra.mxu2 %v264_v62  ;;  %364 = vmatpush.msra.mxu3 %v852_v36  ;;  %v316_v60 = vand.u32 4294901760, %v923_v44  ;;  %vm615_vm2 = vmpackc.low %vm92_vm1, %vm91_vm0  ;;  %v300_v62 = vand.u32 4294901760, %v299_v50  ;;  %v311_v2 = vsub.f32 %v912_v34, %v310_v51  ;;  %v322_v3 = vand.u32 4294901760, %v934_v54 }
  0x23   :  { %153 = vmatpush.bf16.msra.mxu0 %v619_v61  ;;  %204 = vmatpush.msra.mxu1 %v863_v48  ;;  %v943_v61 = vsub.f32 %v171_v14, %v925_v45  ;;  %v306_v6 = vand.u32 4294901760, %v305_v59  ;;  %v760_v14 = vmov 1.0|1.0  }
  0x24   :  { %271 = vmatpush.msra.mxu2 %v270_v7  ;;  %367 = vmatpush.msra.mxu3 %v876_v56  ;;  %v317_v7 = vsub.f32 %v923_v44, %v316_v60  ;;  %v323_v31 = vsub.f32 %v934_v54, %v322_v3 }
  0x25   :  { %206 = vmatpush.msra.mxu1 %v865_v49 }
  0x26   :  { %277 = vmatpush.msra.mxu2 %v276_v13  ;;  %370 = vmatpush.msra.mxu3 %v879_v57  ;;  %v328_v13 = vand.u32 4294901760, %v943_v61  ;;  %v318_v38 = vand.u32 4294901760, %v317_v7 }
  0x27   :  { %154 = vmatpush.bf16.msra.mxu0 %v618_v30  ;;  %208 = vmatpush.msra.mxu1 %v873_v53  ;;  %v312_v30 = vand.u32 4294901760, %v311_v2 }
  0x28   :  { %283 = vmatpush.msra.mxu2 %v282_v40  ;;  %373 = vmatpush.msra.mxu3 %v890_v0  ;;  %v329_v39 = vsub.f32 %v943_v61, %v328_v13  ;;  %v324_v40 = vand.u32 4294901760, %v323_v31 }
  0x29   :  { %210 = vmatpush.msra.mxu1 %v881_v58 }
  0x2a   :  { %289 = vmatpush.msra.mxu2 %v288_v47  ;;  %376 = vmatpush.msra.mxu3 %v901_v11  ;;  %v330_v41 = vand.u32 4294901760, %v329_v39 }
  0x2b   :  { %155 = vmatpush.bf16.msra.mxu0 %v617_v46  ;;  %212 = vmatpush.msra.mxu1 %v892_v1 }
  0x2c   :  { %295 = vmatpush.msra.mxu2 %v294_v55  ;;  %379 = vmatpush.msra.mxu3 %v912_v34 }
  0x2d   :  { %214 = vmatpush.msra.mxu1 %v903_v12 }
  0x2e   :  { %616 = vmatmul.msk.bf16.vlgmr.msra.gmra.mxu0 %vm615_vm2, %v760_v14  ;;  %301 = vmatpush.msra.mxu2 %v300_v62 }
  0x2f   :  { %401 = vmatpush.msrb.mxu0 %v794_v4  ;;  %382 = vmatpush.msra.mxu3 %v923_v44 }
  0x30   :  { %307 = vmatpush.msra.mxu2 %v306_v6  ;;  %216 = vmatpush.msra.mxu1 %v914_v37 }
  0x31   :  { %403 = vmatpush.msrb.mxu0 %v796_v5  ;;  %385 = vmatpush.msra.mxu3 %v934_v54 }
  0x32   :  { %313 = vmatpush.msra.mxu2 %v312_v30  ;;  %218 = vmatpush.msra.mxu1 %v925_v45 }
  0x33   :  { %405 = vmatpush.msrb.mxu0 %v798_v9  ;;  %388 = vmatpush.msra.mxu3 %v943_v61 }
  0x34   :  { %319 = vmatpush.msra.mxu2 %v318_v38  ;;  %448 = vmatpush.msrb.mxu1 %v238_v23 }
  0x35   :  { %407 = vmatpush.msrb.mxu0 %v800_v10  ;;  %625 = vmatpush.msrb.mxu3 %v794_v4 }
  0x36   :  { %325 = vmatpush.msra.mxu2 %v324_v40  ;;  %452 = vmatpush.msrb.mxu1 %v244_v24 }
  0x37   :  { %409 = vmatpush.msrb.mxu0 %v809_v17  ;;  %626 = vmatpush.msrb.mxu3 %v796_v5 }
  0x38   :  { %331 = vmatpush.msra.mxu2 %v330_v41  ;;  %456 = vmatpush.msrb.mxu1 %v250_v27 }
  0x39   :  { %411 = vmatpush.msrb.mxu0 %v811_v18  ;;  %627 = vmatpush.msrb.mxu3 %v798_v9 }
  0x3a   :  { %519 = vmatpush.msrb.mxu2 %v794_v4  ;;  %460 = vmatpush.msrb.mxu1 %v256_v28 }
  0x3b   :  { %413 = vmatpush.msrb.mxu0 %v819_v21  ;;  %628 = vmatpush.msrb.mxu3 %v800_v10 }
  0x3c   :  { %521 = vmatpush.msrb.mxu2 %v796_v5  ;;  %464 = vmatpush.msrb.mxu1 %v262_v33 }
  0x3d   :  { %415 = vmatpush.msrb.mxu0 %v821_v22  ;;  %629 = vmatpush.msrb.mxu3 %v809_v17 }
  0x3e   :  { %523 = vmatpush.msrb.mxu2 %v798_v9  ;;  %468 = vmatpush.msrb.mxu1 %v268_v35 }
  0x3f   :  { %417 = vmatpush.msrb.mxu0 %v863_v48  ;;  %630 = vmatpush.msrb.mxu3 %v811_v18 }
  0x40   :  { %525 = vmatpush.msrb.mxu2 %v800_v10  ;;  %472 = vmatpush.msrb.mxu1 %v274_v43 }
  0x41   :  { %419 = vmatpush.msrb.mxu0 %v865_v49  ;;  %631 = vmatpush.msrb.mxu3 %v819_v21 }
  0x42   :  { %527 = vmatpush.msrb.mxu2 %v809_v17  ;;  %476 = vmatpush.msrb.mxu1 %v280_v52 }
  0x43   :  { %421 = vmatpush.msrb.mxu0 %v873_v53  ;;  %632 = vmatpush.msrb.mxu3 %v821_v22 }
  0x44   :  { %529 = vmatpush.msrb.mxu2 %v811_v18  ;;  %480 = vmatpush.msrb.mxu1 %v286_v63 }
  0x45   :  { %423 = vmatpush.msrb.mxu0 %v881_v58  ;;  %633 = vmatpush.msrb.mxu3 %v863_v48 }
  0x46   :  { %531 = vmatpush.msrb.mxu2 %v819_v21  ;;  %484 = vmatpush.msrb.mxu1 %v292_v8 }
  0x47   :  { %425 = vmatpush.msrb.mxu0 %v892_v1  ;;  %634 = vmatpush.msrb.mxu3 %v865_v49 }
  0x48   :  { %533 = vmatpush.msrb.mxu2 %v821_v22  ;;  %488 = vmatpush.msrb.mxu1 %v298_v32 }
  0x49   :  { %427 = vmatpush.msrb.mxu0 %v903_v12  ;;  %635 = vmatpush.msrb.mxu3 %v873_v53 }
  0x4a   :  { %535 = vmatpush.msrb.mxu2 %v863_v48  ;;  %492 = vmatpush.msrb.mxu1 %v304_v42 }
  0x4b   :  { %429 = vmatpush.msrb.mxu0 %v914_v37  ;;  %636 = vmatpush.msrb.mxu3 %v881_v58 }
  0x4c   :  { %537 = vmatpush.msrb.mxu2 %v865_v49  ;;  %496 = vmatpush.msrb.mxu1 %v310_v51 }
  0x4d   :  { %431 = vmatpush.msrb.mxu0 %v925_v45  ;;  %637 = vmatpush.msrb.mxu3 %v892_v1 }
  0x4e   :  { %539 = vmatpush.msrb.mxu2 %v873_v53  ;;  %500 = vmatpush.msrb.mxu1 %v316_v60 }
  0x4f   :  { %638 = vmatpush.msrb.mxu3 %v903_v12 }
  0x50   :  { %541 = vmatpush.msrb.mxu2 %v881_v58  ;;  %504 = vmatpush.msrb.mxu1 %v322_v3 }
  0x51   :  { %639 = vmatpush.msrb.mxu3 %v914_v37 }
  0x52   :  { %543 = vmatpush.msrb.mxu2 %v892_v1  ;;  %508 = vmatpush.msrb.mxu1 %v328_v13 }
  0x53   :  { %640 = vmatpush.msrb.mxu3 %v925_v45 }
  0x54   :  { %545 = vmatpush.msrb.mxu2 %v903_v12 }
  0x56   :  { %547 = vmatpush.msrb.mxu2 %v914_v37 }
  0x58   :  { %549 = vmatpush.msrb.mxu2 %v925_v45 }
  0xab   :  { %v157_v4 = vpop.f32.mrf.mxu0 }
  0xac   :  { %v219_v5 = vand.u32 4294901760, %v157_v4 }
  0xae   :  { %v220_v9 = vsub.f32 %v157_v4, %v219_v5  ;;  %333 = vmatmul.f32.vlgmr.msra.gmra.mxu2 %v219_v5 }
  0xb0   :  { %391 = vmatmul.f32.vlgmr.msra.gmra.mxu3 %v220_v9  ;;  %v221_v10 = vand.u32 4294901760, %v220_v9 }
  0xb2   :  { %435 = vmatmul.f32.vlgmr.msrb.gmra.mxu0 %v221_v10  ;;  %v222_v15 = vsub.f32 %v220_v9, %v221_v10 }
  0xb3   :  { %v159_v16 = vpop.f32.mrf.mxu0 }
  0xb4   :  { %v227_v17 = vand.u32 4294901760, %v159_v16  ;;  %v223_v18 = vand.u32 4294901760, %v222_v15 }
  0xb6   :  { %v228_v19 = vsub.f32 %v159_v16, %v227_v17  ;;  %224 = vmatmul.f32.vlgmr.msra.gmra.mxu1 %v223_v18  ;;  %337 = vmatmul.f32.gmra.mxu2 %v227_v17 }
  0xb8   :  { %396 = vmatmul.f32.gmra.mxu3 %v228_v19  ;;  %v229_v20 = vand.u32 4294901760, %v228_v19 }
  0xba   :  { %v230_v21 = vsub.f32 %v228_v19, %v229_v20 }
  0xbc   :  { %v231_v22 = vand.u32 4294901760, %v230_v21 }
  0xbe   :  { %232 = vmatmul.f32.gmra.mxu1 %v231_v22  ;;  %551 = vmatmul.f32.vlgmr.msrb.gmra.mxu2 %v219_v5 }
  0xc0   :  { %441 = vmatmul.f32.vlgmr.msrb.gmra.mxu3 %v229_v20 }
  0xc6   :  { %510 = vmatmul.f32.vlgmr.msrb.gmra.mxu1 %v219_v5  ;;  %555 = vmatmul.f32.gmra.mxu2 %v227_v17 }
  0xce   :  { %514 = vmatmul.f32.gmra.mxu1 %v227_v17 }
 0x12f   :  { %v436_v35 = vpop.f32.mrf.mxu0 }
 0x131   :  { %v334_v23 = vpop.f32.mrf.mxu2 }
 0x133   :  { %v225_v24 = vpop.f32.mrf.mxu1  ;;  %v392_v25 = vpop.f32.mrf.mxu3 }
 0x134   :  { %v335_v27 = vadd.f32 %v334_v23, %v225_v24 }
 0x136   :  { %v393_v33 = vadd.f32 %v392_v25, %v335_v27 }
 0x138   :  { %v437_v36 = vadd.f32 %v436_v35, %v393_v33 }
 0x139   :  { %v338_v26 = vpop.f32.mrf.mxu2 }
 0x13b   :  { %v233_v28 = vpop.f32.mrf.mxu1  ;;  %v397_v29 = vpop.f32.mrf.mxu3 }
 0x13c   :  { %v339_v49 = vadd.f32 %v338_v26, %v233_v28 }
 0x13e   :  { %v398_v57 = vadd.f32 %v397_v29, %v339_v49 }
 0x141   :  { %v552_v43 = vpop.f32.mrf.mxu2 }
 0x143   :  { %v511_v48 = vpop.f32.mrf.mxu1  ;;  %v442_v56 = vpop.f32.mrf.mxu3 }
 0x144   :  { %v512_v52 = vadd.f32 %v511_v48, %v437_v36  ;;  %v443_v58 = vadd.f32 %v442_v56, %v398_v57 }
 0x146   :  { %v553_v53 = vadd.f32 %v552_v43, %v512_v52 }
 0x148   :  { %559 = vst [vmem:[#allocation9] sm:$0xff] %v553_v53 }
 0x149   :  { %v556_v1 = vpop.f32.mrf.mxu2 }
 0x14b   :  { %v515_v63 = vpop.f32.mrf.mxu1 }
 0x14c   :  { %v516_v0 = vadd.f32 %v515_v63, %v443_v58 }
 0x14e   :  { %v557_v8 = vadd.f32 %v556_v1, %v516_v0 }
 0x150   :  { %560 = vst [vmem:[#allocation9 + $0x8] sm:$0xff] %v557_v8 }
 0x151   :  { %573 = dma.vmem_to_hbm [thread:$0]  %s566_s2, 256, %s568_s5, [#allocation5], %s758_s28, %s758_s28, %s759_s29  }
 0x152   :  { %751 = dma.done.wait [#allocation5], 256  }
 0x153   :  { %752 = vsyncadd [#allocation5], 4294967040 }
 0x154   :  { %578 = vsyncpa [#allocation4], 1 }
 0x155   :  { %579 = vsyncpa [#allocation7], 1 }
 0x156   :  { %580 = vsyncpa [#allocation5], 1 }

</bundles_post_ra>
